<compile_context>
chip_gen: v7x
topology: tpu7x:2x2x1
jax: 0.10.0
libtpu: 0.0.40
codegen_flags: <defaults>
</compile_context>

<pallas_src>
import jax
import jax.numpy as jnp
import numpy as np
from jax.experimental import pallas as pl
from jax.experimental.pallas import tpu as pltpu

NUM_GROUPS = 8
EPS = 1e-5                      # PyTorch GroupNorm default
_GELU_C = 0.7978845608028654    # sqrt(2/pi)


def _gelu(x):
    # tanh-approximate GELU (nn.GELU(approximate='tanh')); |err| vs exact erf
    # GELU < ~5e-4, and the transcendental lands on the otherwise-idle EUP slot.
    return 0.5 * x * (1.0 + jnp.tanh(_GELU_C * (x + 0.044715 * x * x * x)))


def _block_vmem_bytes(C, L, K, mm_bytes):
    """Rough per-grid-step VMEM footprint (double-buffered IO + temporaries)."""
    f32 = C * L * 4
    io = 4 * f32                       # x block + out block, double-buffered
    temps = 6 * f32                    # y / h / y*y / broadcast working set
    taps = 2 * K * C * L * mm_bytes    # stacked conv1 + conv2 tap slabs
    return io + temps + taps


def _pick_sb(B, T, C, K, mm_bytes, target_lanes=4096, vmem_budget=24 << 20):
    """Sequences per grid step: lane-dense, VMEM-friendly, >=2 steps if possible."""
    best_key, best_sb = None, B
    for sb in range(1, B + 1):
        if B % sb:
            continue
        lanes = sb * T
        if sb != B and lanes % 128 != 0:        # BlockSpec lane-tile alignment
            continue
        nblk = B // sb
        est = _block_vmem_bytes(C, lanes, K, mm_bytes)
        key = (lanes >= 128,                    # unmasked full-vreg stores
               est <= vmem_budget,              # comfortable double-buffering
               nblk >= 2 or B == 1,             # feed both v7x TensorCores
               -abs(lanes - target_lanes))      # amortize ~0.35us/step overhead
        if best_key is None or key > best_key:
            best_key, best_sb = key, sb
    return best_sb


def _make_kernel(C, L, T, K, dilation, pad, matmul_dtype):
    """Kernel over one (C, L) slab holding SB whole sequences (L = SB*T)."""
    inv_denom = 1.0 / float((C // NUM_GROUPS) * T)   # elements per (group, seq)

    def taps_of(v, mask):
        # v: (C, L) in matmul_dtype.  Build the K dilation-shifted taps in
        # registers via XLU roll + per-sequence boundary masks (zero padding).
        cols = []
        for k in range(K):
            off = k * dilation - pad
            if off == 0:
                cols.append(v)
            else:
                vk = pltpu.roll(v, shift=(-off) % L, axis=1)   # vk[l] = v[l+off]
                cols.append(vk * mask[k:k + 1, :])
        return jnp.concatenate(cols, axis=0)                   # (K*C, L)

    def kernel(x_ref, w1_ref, w2_ref, pvec_ref, gmat2_ref, S_ref, ST_ref,
               mask_ref, o_ref):
        pv = pvec_ref[...]                                     # (C, 8) packed params
        b1, g1, be1 = pv[:, 0:1], pv[:, 1:2], pv[:, 2:3]
        b2, g2, be2 = pv[:, 3:4], pv[:, 4:5], pv[:, 5:6]
        gmat2 = gmat2_ref[...]                                 # (2C, 2C) block-diag
        S = S_ref[...]                                         # (L, SB) seq-sum
        ST = ST_ref[...]                                       # (SB, L) broadcast
        mask = mask_ref[...]                                   # (8, L); rows [0,K)

        def group_norm(y, gamma, beta):
            # Per-(group, sequence) stats via one stacked matmul; affine folded
            # into scale/shift so the full-slab work is a single FMA pair.
            yy = jnp.concatenate([y, y * y], axis=0)                       # (2C, L)
            st = jnp.dot(yy, S, preferred_element_type=jnp.float32)        # (2C, SB)
            gst = jnp.dot(gmat2, st, preferred_element_type=jnp.float32)   # (2C, SB)
            mean = gst[:C] * inv_denom
            var = jnp.maximum(gst[C:] * inv_denom - mean * mean, 0.0)
            inv = jax.lax.rsqrt(var + EPS)
            scale = inv * gamma                                            # (C, SB)
            shift = beta - mean * scale
            sf = jnp.dot(jnp.concatenate([scale, shift], axis=0), ST,
                         preferred_element_type=jnp.float32)               # (2C, L)
            return y * sf[:C] + sf[C:]

        x = x_ref[...]                                         # (C, L) f32 residual

        # ---- conv1: taps built in-kernel, one stacked MXU contraction
        y1 = jnp.dot(w1_ref[...], taps_of(x.astype(matmul_dtype), mask),
                     preferred_element_type=jnp.float32) + b1
        h = _gelu(group_norm(y1, g1, be1))
        # TODO(synk): Dropout(p=0.1) is identity (eval mode); training would build
        # the mask with pltpu.prng_seed / pltpu.prng_random_bits.

        # ---- conv2: same tap construction on h (cast to bf16 before rolling to
        # halve the XLU/concat data volume).  On v7x an accumulated sum of K
        # (C,C)@(C,L) dots would avoid the concat entirely (MRB accumulation).
        y2 = jnp.dot(w2_ref[...], taps_of(h.astype(matmul_dtype), mask),
                     preferred_element_type=jnp.float32) + b2
        y2 = group_norm(y2, g2, be2)
        o_ref[...] = _gelu(y2 + x).astype(o_ref.dtype)

    return kernel


def residual_block(x, params, *, dilation=2, kernel_size=3,
                   matmul_dtype=jnp.bfloat16, out_dtype=jnp.float32,
                   flat_output=False):
    """Pallas TPU forward of the PyTorch ResidualBlock (eval mode).

    x: (B, C, T) float32.  matmul_dtype=jnp.bfloat16 (default) uses the
    v6e/v7x MXU fast path with f32 accumulation; the residual, GroupNorm stats
    and all elementwise math stay f32.  matmul_dtype=jnp.float32 is exact.
    flat_output=True returns (C, B*T) and skips the output transpose pass.
    """
    B, C, T = x.shape
    K = kernel_size
    assert K % 2 == 1, "odd kernel_size expected ('same' dilated conv)"
    assert K <= 8
    assert C % NUM_GROUPS == 0
    pad = dilation * (K - 1) // 2
    mm_bytes = jnp.dtype(matmul_dtype).itemsize

    SB = _pick_sb(B, T, C, K, mm_bytes)
    L = SB * T
    nblk = B // SB

    # --- host-side prep (layout plumbing only; small constants via numpy) ---
    x2d = jnp.transpose(x, (1, 0, 2)).reshape(C, B * T).astype(jnp.float32)

    # conv weights (C_out, C_in, K) -> (C_out, K*C_in), matching tap stacking
    w1f = jnp.transpose(params["w1"], (0, 2, 1)).reshape(C, K * C).astype(matmul_dtype)
    w2f = jnp.transpose(params["w2"], (0, 2, 1)).reshape(C, K * C).astype(matmul_dtype)

    # six per-channel vectors packed into one lane-padded (C, 8) array (1 DMA)
    pvec = jnp.stack([params["b1"], params["gamma1"], params["beta1"],
                      params["b2"], params["gamma2"], params["beta2"],
                      jnp.zeros((C,), jnp.float32), jnp.zeros((C,), jnp.float32)],
                     axis=1).astype(jnp.float32)

    gid = np.arange(C) // (C // NUM_GROUPS)
    g1 = (gid[:, None] == gid[None, :]).astype(np.float32)          # (C, C)
    gmat2 = jnp.asarray(np.block([[g1, np.zeros_like(g1)],
                                  [np.zeros_like(g1), g1]]))        # (2C, 2C)

    seg = np.arange(L) // T
    S_np = (seg[:, None] == np.arange(SB)[None, :]).astype(np.float32)
    S = jnp.asarray(S_np)                                            # (L, SB)
    ST = jnp.asarray(np.ascontiguousarray(S_np.T))                   # (SB, L)

    # static per-tap boundary masks (zero padding of the dilated conv)
    tpos = np.arange(L) % T
    mask_np = np.zeros((8, L), np.float32)
    for k in range(K):
        off = k * dilation - pad
        mask_np[k] = ((tpos + off >= 0) & (tpos + off < T)).astype(np.float32)
    mask = jnp.asarray(mask_np).astype(matmul_dtype)                 # (8, L)

    kernel = _make_kernel(C, L, T, K, dilation, pad, matmul_dtype)

    grid_spec = pltpu.PrefetchScalarGridSpec(
        num_scalar_prefetch=0,
        grid=(nblk,),
        in_specs=[
            pl.BlockSpec((C, L), lambda i: (0, i)),          # input slab (f32)
            pl.BlockSpec((C, K * C), lambda i: (0, 0)),      # conv1 weight
            pl.BlockSpec((C, K * C), lambda i: (0, 0)),      # conv2 weight
            pl.BlockSpec((C, 8), lambda i: (0, 0)),          # packed bias/gamma/beta
            pl.BlockSpec((2 * C, 2 * C), lambda i: (0, 0)),  # block-diag group matrix
            pl.BlockSpec((L, SB), lambda i: (0, 0)),         # per-sequence sum matrix
            pl.BlockSpec((SB, L), lambda i: (0, 0)),         # broadcast-back matrix
            pl.BlockSpec((8, L), lambda i: (0, 0)),          # conv boundary masks
        ],
        out_specs=pl.BlockSpec((C, L), lambda i: (0, i)),
    )

    est = _block_vmem_bytes(C, L, K, mm_bytes)
    vmem_limit = int(min(max(est + (4 << 20), 32 << 20), 56 << 20))  # v7x-safe cap

    out2d = pl.pallas_call(
        kernel,
        out_shape=jax.ShapeDtypeStruct((C, B * T), out_dtype),
        grid_spec=grid_spec,
        compiler_params=pltpu.CompilerParams(
            dimension_semantics=("parallel",),
            vmem_limit_bytes=vmem_limit),
    )(x2d, w1f, w2f, pvec, gmat2, S, ST, mask)

    if flat_output:
        return out2d                       # (C, B*T): lets the consumer skip a pass
    return out2d.reshape(C, B, T).transpose(1, 0, 2)          # back to (B, C, T)


def reference(x, params, *, dilation=2, kernel_size=3, approximate_gelu=False):
    """Pure-JAX reference reproducing the PyTorch forward (eval mode)."""
    pad = dilation * (kernel_size - 1) // 2

    def conv(v, w, b):
        y = jax.lax.conv_general_dilated(
            v, w, window_strides=(1,), padding=[(pad, pad)],
            rhs_dilation=(dilation,), dimension_numbers=("NCH", "OIH", "NCH"))
        return y + b[None, :, None]

    def gn(v, gamma, beta):
        B, C, T = v.shape
        vg = v.reshape(B, NUM_GROUPS, C // NUM_GROUPS, T)
        mean = vg.mean(axis=(2, 3), keepdims=True)
        var = ((vg - mean) ** 2).mean(axis=(2, 3), keepdims=True)
        vn = (vg - mean) / jnp.sqrt(var + EPS)
        return vn.reshape(B, C, T) * gamma[None, :, None] + beta[None, :, None]

    gelu = lambda v: jax.nn.gelu(v, approximate=approximate_gelu)
    h = gelu(gn(conv(x, params["w1"], params["b1"]), params["gamma1"], params["beta1"]))
    h = gn(conv(h, params["w2"], params["b2"]), params["gamma2"], params["beta2"])
    return gelu(h + x)


if __name__ == "__main__":
    K, DIL = 3, 2                    # kernel_size=3, dilation=2 -> "same" output
    key = jax.random.PRNGKey(0)

    # (2, 32, 64): single 128-lane block.  (4, 32, 64): 2-step parallel grid.
    for (B, C, T) in [(2, 32, 64), (4, 32, 64)]:
        ks = jax.random.split(jax.random.fold_in(key, B), 5)
        x = jax.random.normal(ks[0], (B, C, T), jnp.float32)

        bound = 1.0 / np.sqrt(C * K)     # Conv1d-style uniform init bound
        params = dict(
            w1=jax.random.uniform(ks[1], (C, C, K), jnp.float32, -bound, bound),
            b1=jax.random.uniform(ks[2], (C,), jnp.float32, -bound, bound),
            w2=jax.random.uniform(ks[3], (C, C, K), jnp.float32, -bound, bound),
            b2=jax.random.uniform(ks[4], (C,), jnp.float32, -bound, bound),
            gamma1=jnp.ones((C,), jnp.float32), beta1=jnp.zeros((C,), jnp.float32),
            gamma2=jnp.ones((C,), jnp.float32), beta2=jnp.zeros((C,), jnp.float32),
        )

        ref_tanh = reference(x, params, dilation=DIL, kernel_size=K,
                             approximate_gelu=True)
        ref_exact = reference(x, params, dilation=DIL, kernel_size=K,
                              approximate_gelu=False)

        # exact f32-operand path: tight check against both GELU variants
        out_f32 = jax.block_until_ready(
            residual_block(x, params, dilation=DIL, kernel_size=K,
                           matmul_dtype=jnp.float32))
        np.testing.assert_allclose(np.asarray(out_f32), np.asarray(ref_tanh),
                                   atol=1e-3, rtol=1e-3)
        np.testing.assert_allclose(np.asarray(out_f32), np.asarray(ref_exact),
                                   atol=3e-3, rtol=3e-3)

        # default bf16-operand MXU fast path (f32 residual / stats): sanity check
        out_bf16 = jax.block_until_ready(
            residual_block(x, params, dilation=DIL, kernel_size=K))
        np.testing.assert_allclose(np.asarray(out_bf16), np.asarray(ref_exact),
                                   atol=1e-1, rtol=1e-1)

    print("KERNEL_OK")
</pallas_src>

<mosaic_0001>
module attributes {stable_mosaic.version = 11 : i64} {
  func.func @kernel(%arg0: i32, %arg1: memref<32x128xf32, #tpu.memory_space<vmem>>, %arg2: memref<32x96xf32, #tpu.memory_space<vmem>>, %arg3: memref<32x96xf32, #tpu.memory_space<vmem>>, %arg4: memref<32x8xf32, #tpu.memory_space<vmem>>, %arg5: memref<64x64xf32, #tpu.memory_space<vmem>>, %arg6: memref<128x2xf32, #tpu.memory_space<vmem>>, %arg7: memref<2x128xf32, #tpu.memory_space<vmem>>, %arg8: memref<8x128xf32, #tpu.memory_space<vmem>>, %arg9: memref<32x128xf32, #tpu.memory_space<vmem>>) attributes {dimension_semantics = [#tpu.dimension_semantics<parallel>], iteration_bounds = array<i64: 1>, scalar_prefetch = 0 : i64, scratch_operands = 0 : i64, tpu.core_type = #tpu.core_type<tc>, window_params = [{transform_indices = @transform_0, window_bounds = array<i64: 32, 128>}, {pipeline_mode = #tpu.pipeline_mode<synchronous>, transform_indices = @transform_1, window_bounds = array<i64: 32, 96>}, {pipeline_mode = #tpu.pipeline_mode<synchronous>, transform_indices = @transform_2, window_bounds = array<i64: 32, 96>}, {pipeline_mode = #tpu.pipeline_mode<synchronous>, transform_indices = @transform_3, window_bounds = array<i64: 32, 8>}, {pipeline_mode = #tpu.pipeline_mode<synchronous>, transform_indices = @transform_4, window_bounds = array<i64: 64, 64>}, {pipeline_mode = #tpu.pipeline_mode<synchronous>, transform_indices = @transform_5, window_bounds = array<i64: 128, 2>}, {pipeline_mode = #tpu.pipeline_mode<synchronous>, transform_indices = @transform_6, window_bounds = array<i64: 2, 128>}, {pipeline_mode = #tpu.pipeline_mode<synchronous>, transform_indices = @transform_7, window_bounds = array<i64: 8, 128>}, {transform_indices = @transform_8, window_bounds = array<i64: 32, 128>}]} {
    %c0 = arith.constant 0 : index
    %c0_0 = arith.constant 0 : index
    %0 = vector.load %arg4[%c0, %c0_0] : memref<32x8xf32, #tpu.memory_space<vmem>>, vector<32x8xf32>
    %1 = vector.extract_strided_slice %0 {offsets = [0, 0], sizes = [32, 1], strides = [1, 1]} : vector<32x8xf32> to vector<32x1xf32>
    %2 = vector.extract_strided_slice %0 {offsets = [0, 1], sizes = [32, 1], strides = [1, 1]} : vector<32x8xf32> to vector<32x1xf32>
    %3 = vector.extract_strided_slice %0 {offsets = [0, 2], sizes = [32, 1], strides = [1, 1]} : vector<32x8xf32> to vector<32x1xf32>
    %4 = vector.extract_strided_slice %0 {offsets = [0, 3], sizes = [32, 1], strides = [1, 1]} : vector<32x8xf32> to vector<32x1xf32>
    %5 = vector.extract_strided_slice %0 {offsets = [0, 4], sizes = [32, 1], strides = [1, 1]} : vector<32x8xf32> to vector<32x1xf32>
    %6 = vector.extract_strided_slice %0 {offsets = [0, 5], sizes = [32, 1], strides = [1, 1]} : vector<32x8xf32> to vector<32x1xf32>
    %c0_1 = arith.constant 0 : index
    %c0_2 = arith.constant 0 : index
    %7 = vector.load %arg5[%c0_1, %c0_2] : memref<64x64xf32, #tpu.memory_space<vmem>>, vector<64x64xf32>
    %c0_3 = arith.constant 0 : index
    %c0_4 = arith.constant 0 : index
    %8 = vector.load %arg6[%c0_3, %c0_4] : memref<128x2xf32, #tpu.memory_space<vmem>>, vector<128x2xf32>
    %c0_5 = arith.constant 0 : index
    %c0_6 = arith.constant 0 : index
    %9 = vector.load %arg7[%c0_5, %c0_6] : memref<2x128xf32, #tpu.memory_space<vmem>>, vector<2x128xf32>
    %c0_7 = arith.constant 0 : index
    %c0_8 = arith.constant 0 : index
    %10 = vector.load %arg8[%c0_7, %c0_8] : memref<8x128xf32, #tpu.memory_space<vmem>>, vector<8x128xf32>
    %c0_9 = arith.constant 0 : index
    %c0_10 = arith.constant 0 : index
    %11 = vector.load %arg1[%c0_9, %c0_10] : memref<32x128xf32, #tpu.memory_space<vmem>>, vector<32x128xf32>
    %c0_11 = arith.constant 0 : index
    %c0_12 = arith.constant 0 : index
    %12 = vector.load %arg2[%c0_11, %c0_12] : memref<32x96xf32, #tpu.memory_space<vmem>>, vector<32x96xf32>
    %c2_i32 = arith.constant 2 : i32
    %13 = tpu.dynamic_rotate %11 by %c2_i32 dim 1 : vector<32x128xf32>, i32 -> vector<32x128xf32>
    %14 = vector.extract_strided_slice %10 {offsets = [0, 0], sizes = [1, 128], strides = [1, 1]} : vector<8x128xf32> to vector<1x128xf32>
    %15 = vector.broadcast %14 : vector<1x128xf32> to vector<32x128xf32>
    %16 = arith.mulf %13, %15 : vector<32x128xf32>
    %c126_i32 = arith.constant 126 : i32
    %17 = tpu.dynamic_rotate %11 by %c126_i32 dim 1 : vector<32x128xf32>, i32 -> vector<32x128xf32>
    %18 = vector.extract_strided_slice %10 {offsets = [2, 0], sizes = [1, 128], strides = [1, 1]} : vector<8x128xf32> to vector<1x128xf32>
    %19 = vector.broadcast %18 : vector<1x128xf32> to vector<32x128xf32>
    %20 = arith.mulf %17, %19 : vector<32x128xf32>
    %21 = tpu.concatenate %16, %11, %20 in 0 : vector<32x128xf32>, vector<32x128xf32>, vector<32x128xf32> -> vector<96x128xf32>
    %cst = arith.constant dense<0.000000e+00> : vector<32x128xf32>
    %22 = tpu.matmul %12, %21, %cst {dimension_numbers = #tpu.dot_dimension_numbers<[1], [0], [0], [1], [0, 0, 1, 1], [], []>} : vector<32x96xf32>, vector<96x128xf32>, vector<32x128xf32> -> vector<32x128xf32>
    %23 = vector.broadcast %1 : vector<32x1xf32> to vector<32x128xf32>
    %24 = arith.addf %22, %23 : vector<32x128xf32>
    %25 = arith.mulf %24, %24 : vector<32x128xf32>
    %26 = tpu.concatenate %24, %25 in 0 : vector<32x128xf32>, vector<32x128xf32> -> vector<64x128xf32>
    %cst_13 = arith.constant dense<0.000000e+00> : vector<64x2xf32>
    %27 = tpu.matmul %26, %8, %cst_13 {dimension_numbers = #tpu.dot_dimension_numbers<[1], [0], [0], [1], [0, 0, 1, 1], [], []>} : vector<64x128xf32>, vector<128x2xf32>, vector<64x2xf32> -> vector<64x2xf32>
    %cst_14 = arith.constant dense<0.000000e+00> : vector<64x2xf32>
    %28 = tpu.matmul %7, %27, %cst_14 {dimension_numbers = #tpu.dot_dimension_numbers<[1], [0], [0], [1], [0, 0, 1, 1], [], []>} : vector<64x64xf32>, vector<64x2xf32>, vector<64x2xf32> -> vector<64x2xf32>
    %29 = vector.extract_strided_slice %28 {offsets = [0, 0], sizes = [32, 2], strides = [1, 1]} : vector<64x2xf32> to vector<32x2xf32>
    %cst_15 = arith.constant 3.906250e-03 : f32
    %30 = vector.broadcast %cst_15 : f32 to vector<32x2xf32>
    %31 = arith.mulf %29, %30 : vector<32x2xf32>
    %32 = vector.extract_strided_slice %28 {offsets = [32, 0], sizes = [32, 2], strides = [1, 1]} : vector<64x2xf32> to vector<32x2xf32>
    %cst_16 = arith.constant 3.906250e-03 : f32
    %33 = vector.broadcast %cst_16 : f32 to vector<32x2xf32>
    %34 = arith.mulf %32, %33 : vector<32x2xf32>
    %35 = arith.mulf %31, %31 : vector<32x2xf32>
    %36 = arith.subf %34, %35 : vector<32x2xf32>
    %cst_17 = arith.constant 0.000000e+00 : f32
    %37 = vector.broadcast %cst_17 : f32 to vector<32x2xf32>
    %38 = arith.maximumf %36, %37 : vector<32x2xf32>
    %cst_18 = arith.constant 9.99999974E-6 : f32
    %39 = vector.broadcast %cst_18 : f32 to vector<32x2xf32>
    %40 = arith.addf %38, %39 : vector<32x2xf32>
    %41 = math.rsqrt %40 : vector<32x2xf32>
    %42 = vector.broadcast %2 : vector<32x1xf32> to vector<32x2xf32>
    %43 = arith.mulf %41, %42 : vector<32x2xf32>
    %44 = arith.mulf %31, %43 : vector<32x2xf32>
    %45 = vector.broadcast %3 : vector<32x1xf32> to vector<32x2xf32>
    %46 = arith.subf %45, %44 : vector<32x2xf32>
    %47 = tpu.concatenate %43, %46 in 0 : vector<32x2xf32>, vector<32x2xf32> -> vector<64x2xf32>
    %cst_19 = arith.constant dense<0.000000e+00> : vector<64x128xf32>
    %48 = tpu.matmul %47, %9, %cst_19 {dimension_numbers = #tpu.dot_dimension_numbers<[1], [0], [0], [1], [0, 0, 1, 1], [], []>} : vector<64x2xf32>, vector<2x128xf32>, vector<64x128xf32> -> vector<64x128xf32>
    %49 = vector.extract_strided_slice %48 {offsets = [0, 0], sizes = [32, 128], strides = [1, 1]} : vector<64x128xf32> to vector<32x128xf32>
    %50 = arith.mulf %24, %49 : vector<32x128xf32>
    %51 = vector.extract_strided_slice %48 {offsets = [32, 0], sizes = [32, 128], strides = [1, 1]} : vector<64x128xf32> to vector<32x128xf32>
    %52 = arith.addf %50, %51 : vector<32x128xf32>
    %cst_20 = arith.constant 5.000000e-01 : f32
    %53 = vector.broadcast %cst_20 : f32 to vector<32x128xf32>
    %54 = arith.mulf %53, %52 : vector<32x128xf32>
    %cst_21 = arith.constant 4.471500e-02 : f32
    %55 = vector.broadcast %cst_21 : f32 to vector<32x128xf32>
    %56 = arith.mulf %55, %52 : vector<32x128xf32>
    %57 = arith.mulf %56, %52 : vector<32x128xf32>
    %58 = arith.mulf %57, %52 : vector<32x128xf32>
    %59 = arith.addf %52, %58 : vector<32x128xf32>
    %cst_22 = arith.constant 0.797884583 : f32
    %60 = vector.broadcast %cst_22 : f32 to vector<32x128xf32>
    %61 = arith.mulf %60, %59 : vector<32x128xf32>
    %62 = math.tanh %61 : vector<32x128xf32>
    %cst_23 = arith.constant 1.000000e+00 : f32
    %63 = vector.broadcast %cst_23 : f32 to vector<32x128xf32>
    %64 = arith.addf %63, %62 : vector<32x128xf32>
    %65 = arith.mulf %54, %64 : vector<32x128xf32>
    %c0_24 = arith.constant 0 : index
    %c0_25 = arith.constant 0 : index
    %66 = vector.load %arg3[%c0_24, %c0_25] : memref<32x96xf32, #tpu.memory_space<vmem>>, vector<32x96xf32>
    %c2_i32_26 = arith.constant 2 : i32
    %67 = tpu.dynamic_rotate %65 by %c2_i32_26 dim 1 : vector<32x128xf32>, i32 -> vector<32x128xf32>
    %68 = vector.extract_strided_slice %10 {offsets = [0, 0], sizes = [1, 128], strides = [1, 1]} : vector<8x128xf32> to vector<1x128xf32>
    %69 = vector.broadcast %68 : vector<1x128xf32> to vector<32x128xf32>
    %70 = arith.mulf %67, %69 : vector<32x128xf32>
    %c126_i32_27 = arith.constant 126 : i32
    %71 = tpu.dynamic_rotate %65 by %c126_i32_27 dim 1 : vector<32x128xf32>, i32 -> vector<32x128xf32>
    %72 = vector.extract_strided_slice %10 {offsets = [2, 0], sizes = [1, 128], strides = [1, 1]} : vector<8x128xf32> to vector<1x128xf32>
    %73 = vector.broadcast %72 : vector<1x128xf32> to vector<32x128xf32>
    %74 = arith.mulf %71, %73 : vector<32x128xf32>
    %75 = tpu.concatenate %70, %65, %74 in 0 : vector<32x128xf32>, vector<32x128xf32>, vector<32x128xf32> -> vector<96x128xf32>
    %cst_28 = arith.constant dense<0.000000e+00> : vector<32x128xf32>
    %76 = tpu.matmul %66, %75, %cst_28 {dimension_numbers = #tpu.dot_dimension_numbers<[1], [0], [0], [1], [0, 0, 1, 1], [], []>} : vector<32x96xf32>, vector<96x128xf32>, vector<32x128xf32> -> vector<32x128xf32>
    %77 = vector.broadcast %4 : vector<32x1xf32> to vector<32x128xf32>
    %78 = arith.addf %76, %77 : vector<32x128xf32>
    %79 = arith.mulf %78, %78 : vector<32x128xf32>
    %80 = tpu.concatenate %78, %79 in 0 : vector<32x128xf32>, vector<32x128xf32> -> vector<64x128xf32>
    %cst_29 = arith.constant dense<0.000000e+00> : vector<64x2xf32>
    %81 = tpu.matmul %80, %8, %cst_29 {dimension_numbers = #tpu.dot_dimension_numbers<[1], [0], [0], [1], [0, 0, 1, 1], [], []>} : vector<64x128xf32>, vector<128x2xf32>, vector<64x2xf32> -> vector<64x2xf32>
    %cst_30 = arith.constant dense<0.000000e+00> : vector<64x2xf32>
    %82 = tpu.matmul %7, %81, %cst_30 {dimension_numbers = #tpu.dot_dimension_numbers<[1], [0], [0], [1], [0, 0, 1, 1], [], []>} : vector<64x64xf32>, vector<64x2xf32>, vector<64x2xf32> -> vector<64x2xf32>
    %83 = vector.extract_strided_slice %82 {offsets = [0, 0], sizes = [32, 2], strides = [1, 1]} : vector<64x2xf32> to vector<32x2xf32>
    %cst_31 = arith.constant 3.906250e-03 : f32
    %84 = vector.broadcast %cst_31 : f32 to vector<32x2xf32>
    %85 = arith.mulf %83, %84 : vector<32x2xf32>
    %86 = vector.extract_strided_slice %82 {offsets = [32, 0], sizes = [32, 2], strides = [1, 1]} : vector<64x2xf32> to vector<32x2xf32>
    %cst_32 = arith.constant 3.906250e-03 : f32
    %87 = vector.broadcast %cst_32 : f32 to vector<32x2xf32>
    %88 = arith.mulf %86, %87 : vector<32x2xf32>
    %89 = arith.mulf %85, %85 : vector<32x2xf32>
    %90 = arith.subf %88, %89 : vector<32x2xf32>
    %cst_33 = arith.constant 0.000000e+00 : f32
    %91 = vector.broadcast %cst_33 : f32 to vector<32x2xf32>
    %92 = arith.maximumf %90, %91 : vector<32x2xf32>
    %cst_34 = arith.constant 9.99999974E-6 : f32
    %93 = vector.broadcast %cst_34 : f32 to vector<32x2xf32>
    %94 = arith.addf %92, %93 : vector<32x2xf32>
    %95 = math.rsqrt %94 : vector<32x2xf32>
    %96 = vector.broadcast %5 : vector<32x1xf32> to vector<32x2xf32>
    %97 = arith.mulf %95, %96 : vector<32x2xf32>
    %98 = arith.mulf %85, %97 : vector<32x2xf32>
    %99 = vector.broadcast %6 : vector<32x1xf32> to vector<32x2xf32>
    %100 = arith.subf %99, %98 : vector<32x2xf32>
    %101 = tpu.concatenate %97, %100 in 0 : vector<32x2xf32>, vector<32x2xf32> -> vector<64x2xf32>
    %cst_35 = arith.constant dense<0.000000e+00> : vector<64x128xf32>
    %102 = tpu.matmul %101, %9, %cst_35 {dimension_numbers = #tpu.dot_dimension_numbers<[1], [0], [0], [1], [0, 0, 1, 1], [], []>} : vector<64x2xf32>, vector<2x128xf32>, vector<64x128xf32> -> vector<64x128xf32>
    %103 = vector.extract_strided_slice %102 {offsets = [0, 0], sizes = [32, 128], strides = [1, 1]} : vector<64x128xf32> to vector<32x128xf32>
    %104 = arith.mulf %78, %103 : vector<32x128xf32>
    %105 = vector.extract_strided_slice %102 {offsets = [32, 0], sizes = [32, 128], strides = [1, 1]} : vector<64x128xf32> to vector<32x128xf32>
    %106 = arith.addf %104, %105 : vector<32x128xf32>
    %107 = arith.addf %106, %11 : vector<32x128xf32>
    %cst_36 = arith.constant 5.000000e-01 : f32
    %108 = vector.broadcast %cst_36 : f32 to vector<32x128xf32>
    %109 = arith.mulf %108, %107 : vector<32x128xf32>
    %cst_37 = arith.constant 4.471500e-02 : f32
    %110 = vector.broadcast %cst_37 : f32 to vector<32x128xf32>
    %111 = arith.mulf %110, %107 : vector<32x128xf32>
    %112 = arith.mulf %111, %107 : vector<32x128xf32>
    %113 = arith.mulf %112, %107 : vector<32x128xf32>
    %114 = arith.addf %107, %113 : vector<32x128xf32>
    %cst_38 = arith.constant 0.797884583 : f32
    %115 = vector.broadcast %cst_38 : f32 to vector<32x128xf32>
    %116 = arith.mulf %115, %114 : vector<32x128xf32>
    %117 = math.tanh %116 : vector<32x128xf32>
    %cst_39 = arith.constant 1.000000e+00 : f32
    %118 = vector.broadcast %cst_39 : f32 to vector<32x128xf32>
    %119 = arith.addf %118, %117 : vector<32x128xf32>
    %120 = arith.mulf %109, %119 : vector<32x128xf32>
    %c0_40 = arith.constant 0 : index
    %c0_41 = arith.constant 0 : index
    %121 = vector.load %arg9[%c0_40, %c0_41] : memref<32x128xf32, #tpu.memory_space<vmem>>, vector<32x128xf32>
    tpu.vector_store %arg9[%c0_40, %c0_41], %120 {strides = array<i32>} : memref<32x128xf32, #tpu.memory_space<vmem>>, vector<32x128xf32>,
    return
  }
  func.func @transform_0(%arg0: i32) -> (i32, i32) {
    %c0_i32 = arith.constant 0 : i32
    %c0_i32_0 = arith.constant 0 : i32
    return %c0_i32, %arg0 : i32, i32
  }
  func.func @transform_1(%arg0: i32) -> (i32, i32) {
    %c0_i32 = arith.constant 0 : i32
    %c0_i32_0 = arith.constant 0 : i32
    %c0_i32_1 = arith.constant 0 : i32
    return %c0_i32, %c0_i32_0 : i32, i32
  }
  func.func @transform_2(%arg0: i32) -> (i32, i32) {
    %c0_i32 = arith.constant 0 : i32
    %c0_i32_0 = arith.constant 0 : i32
    %c0_i32_1 = arith.constant 0 : i32
    return %c0_i32, %c0_i32_0 : i32, i32
  }
  func.func @transform_3(%arg0: i32) -> (i32, i32) {
    %c0_i32 = arith.constant 0 : i32
    %c0_i32_0 = arith.constant 0 : i32
    %c0_i32_1 = arith.constant 0 : i32
    return %c0_i32, %c0_i32_0 : i32, i32
  }
  func.func @transform_4(%arg0: i32) -> (i32, i32) {
    %c0_i32 = arith.constant 0 : i32
    %c0_i32_0 = arith.constant 0 : i32
    %c0_i32_1 = arith.constant 0 : i32
    return %c0_i32, %c0_i32_0 : i32, i32
  }
  func.func @transform_5(%arg0: i32) -> (i32, i32) {
    %c0_i32 = arith.constant 0 : i32
    %c0_i32_0 = arith.constant 0 : i32
    %c0_i32_1 = arith.constant 0 : i32
    return %c0_i32, %c0_i32_0 : i32, i32
  }
  func.func @transform_6(%arg0: i32) -> (i32, i32) {
    %c0_i32 = arith.constant 0 : i32
    %c0_i32_0 = arith.constant 0 : i32
    %c0_i32_1 = arith.constant 0 : i32
    return %c0_i32, %c0_i32_0 : i32, i32
  }
  func.func @transform_7(%arg0: i32) -> (i32, i32) {
    %c0_i32 = arith.constant 0 : i32
    %c0_i32_0 = arith.constant 0 : i32
    %c0_i32_1 = arith.constant 0 : i32
    return %c0_i32, %c0_i32_0 : i32, i32
  }
  func.func @transform_8(%arg0: i32) -> (i32, i32) {
    %c0_i32 = arith.constant 0 : i32
    %c0_i32_0 = arith.constant 0 : i32
    return %c0_i32, %arg0 : i32, i32
  }
}

</mosaic_0001>

<bundles_post_ra>
// kernel: tpu_custom_call.1
= control target key start
LH: loop header
LB: loop body
LE: loop exit
PB: predicated region body
PF: predicated region fallthrough
CT: control target
= control target key end

     0   :  { %s1970_s9 = smov 2   ;;  %s2442_s0 = inlined_call_operand.vmem [shape: f32[32,128], index: 0, kind: input, shape index: {}]   ;;  %s2443_s1 = inlined_call_operand.vmem [shape: f32[32,96], index: 1, kind: input, shape index: {}]   ;;  %s2444_s2 = inlined_call_operand.vmem [shape: f32[32,96], index: 2, kind: input, shape index: {}]   ;;  %s2445_s3 = inlined_call_operand.vmem [shape: f32[32,8], index: 3, kind: input, shape index: {}]   ;;  %s2446_s4 = inlined_call_operand.vmem [shape: f32[64,64], index: 4, kind: input, shape index: {}]   ;;  %s2447_s5 = inlined_call_operand.vmem [shape: f32[128,2], index: 5, kind: input, shape index: {}]   ;;  %s2448_s6 = inlined_call_operand.vmem [shape: f32[2,128], index: 6, kind: input, shape index: {}]   ;;  %s2449_s7 = inlined_call_operand.vmem [shape: f32[8,128], index: 7, kind: input, shape index: {}]   ;;  %s2450_s8 = inlined_call_operand.hbm [shape: f32[32,128], index: 8, kind: output, shape index: {}]  }
   0x1   :  { %v2029_v0 = vld [vmem:[%s2442_s0 + $0x10] sm:$0xff]  ;;  %v2034_v1 = vld [vmem:[%s2442_s0] sm:$0xff]  ;;  %v2043_v2 = vld [vmem:[%s2442_s0 + $0x18] sm:$0xff] }
   0x2   :  { %72 = vrot.lane.b32.xlu1 %v2029_v0, %s1970_s9  ;;  %68 = vrot.lane.b32.xlu0 %v2034_v1, %s1970_s9  ;;  %v2048_v3 = vld [vmem:[%s2442_s0 + $0x8] sm:$0xff] }
   0x3   :  { %13 = vsyncpa [#allocation3], 0  ;;  %s1971_s14 = smov 126   ;;  %v64_v4 = vld [vmem:[%s2443_s1] sm:$0xff]  ;;  %vm120_vm0 = vcmask 785408   ;;  %v2069_v5 = vld [vmem:[%s2445_s3 + $0x8] sm:$0xff]  ;;  %v76_v31 = vlaneseq  ;;  %v1743_v49 = vpack.c.bf16 %v2048_v3, %v2034_v1  ;;  %v1747_v53 = vpack.c.bf16 %v2043_v2, %v2029_v0 }
   0x4   :  { %1527 = vmatprep.mubr.msk.f32.mxu0 %vm120_vm0, %v64_v4  ;;  %v2074_v6 = vld [vmem:[%s2445_s3] sm:$0xff]  ;;  %v1972_v7 = vmov 0   ;;  %v43_v9 = vld [vmem:[%s2447_s5 + $0x8] sm:$0xff]  ;;  %v2087_v10 = vld [vmem:[%s2445_s3 + $0x10] sm:$0xff]  ;;  %vm327_vm1 = vcmask 523264   ;;  %vm554_vm2 = vcmask 1041408  }
   0x5   :  { %1899 = vset.pattern.permute.xlu1 %v1972_v7  ;;  %1898 = vset.pattern.permute.xlu0 %v1972_v7  ;;  %v42_v8 = vld [vmem:[%s2447_s5] sm:$0xff]  ;;  %v44_v12 = vld [vmem:[%s2447_s5 + $0x10] sm:$0xff]  ;;  %v45_v13 = vld [vmem:[%s2447_s5 + $0x18] sm:$0xff]  ;;  %v77_v32 = vshrl.u32 %v76_v31, 7  ;;  %v1974_v31 = vmov 2   ;;  %vm529_vm3 = vcmask 15360  }
   0x6   :  { %74 = vrot.lane.b32.xlu1 %v2043_v2, %s1970_s9  ;;  %70 = vrot.lane.b32.xlu0 %v2048_v3, %s1970_s9  ;;  %v2089_v11 = vpack.c.bf16 %v43_v9, %v42_v8  ;;  %v2100_v14 = vld [vmem:[%s2445_s3 + $0x18] sm:$0xff]  ;;  %v2102_v15 = vpack.c.bf16 %v45_v13, %v44_v12  ;;  %v46_v16 = vld [vmem:[%s2447_s5 + $0x20] sm:$0xff] }
   0x7   :  { %v47_v17 = vld [vmem:[%s2447_s5 + $0x28] sm:$0xff]  ;;  %v48_v19 = vld [vmem:[%s2447_s5 + $0x30] sm:$0xff]  ;;  %v49_v20 = vld [vmem:[%s2447_s5 + $0x38] sm:$0xff]  ;;  %v78_v33 = vsub.s32 0, %v77_v32  ;;  %v94_v45 = vsub.s32 2, %v77_v32 }
   0x8   :  { %1760 = vmatprep.subr.bf16.mxu1 %v2089_v11  ;;  %v2114_v18 = vpack.c.bf16 %v47_v17, %v46_v16  ;;  %v2125_v21 = vpack.c.bf16 %v49_v20, %v48_v19  ;;  %v50_v22 = vld [vmem:[%s2447_s5 + $0x40] sm:$0xff]  ;;  %v51_v23 = vld [vmem:[%s2447_s5 + $0x48] sm:$0xff]  ;;  %v52_v25 = vld [vmem:[%s2447_s5 + $0x50] sm:$0xff] }
   0x9   :  { %1762 = vmatpush3.bf16.msra.mxu1 %v2089_v11  ;;  %v2135_v24 = vpack.c.bf16 %v51_v23, %v50_v22  ;;  %v53_v26 = vld [vmem:[%s2447_s5 + $0x58] sm:$0xff]  ;;  %v54_v28 = vld [vmem:[%s2447_s5 + $0x60] sm:$0xff]  ;;  %v55_v29 = vld [vmem:[%s2447_s5 + $0x68] sm:$0xff] }
   0xa   :  { %86 = vrot.lane.b32.xlu1 %v2048_v3, %s1971_s14  ;;  %84 = vrot.lane.b32.xlu0 %v2034_v1, %s1971_s14  ;;  %v2145_v27 = vpack.c.bf16 %v53_v26, %v52_v25  ;;  %v2155_v30 = vpack.c.bf16 %v55_v29, %v54_v28  ;;  %v59_v34 = vld [vmem:[%s2449_s7] sm:$0xff]  ;;  %v65_v60 = vld [vmem:[%s2443_s1 + $0x8] sm:$0xff]  ;;  %v1973_v29 = vmov 1  }
   0xb   :  { %1764 = vmatprep.subr.bf16.mxu1 %v2102_v15  ;;  %v2163_v37 = vrot.slane %v59_v34, %v78_v33  ;;  %v2171_v50 = vrot.slane %v59_v34, %v94_v45  ;;  %v66_v61 = vld [vmem:[%s2443_s1 + $0x10] sm:$0xff]  ;;  %v67_v62 = vld [vmem:[%s2443_s1 + $0x18] sm:$0xff]  ;;  %v2224_v28 = vld [vmem:[%s2446_s4] sm:$0xff] }
   0xc   :  { %v56_v63 = vld [vmem:[%s2447_s5 + $0x70] sm:$0xff]  ;;  %v2239_v45 = vld [vmem:[%s2446_s4 + $0x8] sm:$0xff] }
   0xd   :  { %1766 = vmatpush3.bf16.msra.mxu1 %v2102_v15 }
   0xe   :  { %90 = vrot.lane.b32.xlu1 %v2043_v2, %s1971_s14  ;;  %88 = vrot.lane.b32.xlu0 %v2029_v0, %s1971_s14  ;;  %v57_v0 = vld [vmem:[%s2447_s5 + $0x78] sm:$0xff] }
   0xf   :  { %1768 = vmatprep.subr.bf16.mxu1 %v2114_v18  ;;  %v2197_v1 = vpack.c.bf16 %v57_v0, %v56_v63 }
  0x11   :  { %1770 = vmatpush3.bf16.msra.mxu1 %v2114_v18 }
  0x12   :  { %107 = vperm.xlu1 %1899, %v2069_v5   ;;  %102 = vperm.xlu0 %1898, %v2074_v6  }
  0x13   :  { %1772 = vmatprep.subr.bf16.mxu1 %v2125_v21 }
  0x15   :  { %1774 = vmatpush3.bf16.msra.mxu1 %v2125_v21 }
  0x16   :  { %112 = vperm.xlu1 %1899, %v2087_v10   ;;  %117 = vperm.xlu0 %1898, %v2100_v14  }
  0x17   :  { %1776 = vmatprep.subr.bf16.mxu1 %v2135_v24 }
  0x19   :  { %1778 = vmatpush3.bf16.msra.mxu1 %v2135_v24 }
  0x1a   :  { %1780 = vmatprep.subr.bf16.mxu1 %v2145_v27  ;;  %1900 = vset.pattern.permute.xlu1 %v1973_v29 }
  0x1b   :  { %1901 = vset.pattern.permute.xlu0 %v1973_v29  ;;  %486 = vperm.xlu1 %1900, %v2074_v6  }
  0x1c   :  { %490 = vperm.xlu0 %1901, %v2069_v5  }
  0x1d   :  { %1782 = vmatpush3.bf16.msra.mxu1 %v2145_v27 }
  0x1e   :  { %1784 = vmatprep.subr.bf16.mxu1 %v2155_v30 }
  0x1f   :  { %494 = vperm.xlu1 %1900, %v2087_v10  }
  0x20   :  { %1902 = vset.pattern.permute.xlu0 %v1974_v31 }
  0x21   :  { %1786 = vmatpush3.bf16.msra.mxu1 %v2155_v30  ;;  %510 = vperm.xlu0 %1902, %v2074_v6  }
  0x22   :  { %1788 = vmatprep.subr.bf16.mxu1 %v2197_v1 }
  0x23   :  { %498 = vperm.xlu1 %1900, %v2100_v14  }
  0x25   :  { %1790 = vmatpush3.bf16.msra.mxu1 %v2197_v1  ;;  %522 = vperm.xlu0 %1902, %v2100_v14  }
  0x27   :  { %1903 = vset.pattern.permute.xlu1 %v1974_v31 }
  0x28   :  { %514 = vperm.xlu1 %1903, %v2069_v5  }
  0x2c   :  { %518 = vperm.xlu1 %1903, %v2087_v10  }
  0x74   :  { %v73_v35 = vpop.permute.xlu1 %72  ;;  %v69_v36 = vpop.permute.xlu0 %68 }
  0x75   :  { %v82_v40 = vmul.f32 %v2163_v37, %v73_v35  ;;  %v80_v41 = vmul.f32 %v2163_v37, %v69_v36 }
  0x78   :  { %v75_v38 = vpop.permute.xlu1 %74  ;;  %v71_v39 = vpop.permute.xlu0 %70 }
  0x79   :  { %v83_v42 = vmul.f32 %v2163_v37, %v75_v38  ;;  %v81_v43 = vmul.f32 %v2163_v37, %v71_v39 }
  0x7b   :  { %v1735_v44 = vpack.c.bf16 %v81_v43, %v80_v41  ;;  %v1739_v46 = vpack.c.bf16 %v83_v42, %v82_v40 }
  0x7c   :  { %v87_v47 = vpop.permute.xlu1 %86  ;;  %v85_v48 = vpop.permute.xlu0 %84 }
  0x7d   :  { %1736 = vmatprep.subr.bf16.mxu0 %v1735_v44  ;;  %v97_v51 = vmul.f32 %v2171_v50, %v87_v47  ;;  %v96_v52 = vmul.f32 %v2171_v50, %v85_v48  ;;  %v2253_v47 = vld [vmem:[%s2446_s4 + $0x18] sm:$0xff]  ;;  %v2258_v48 = vld [vmem:[%s2446_s4 + $0x20] sm:$0xff] }
  0x7e   :  { %1738 = vmatpush3.bf16.msra.mxu0 %v1735_v44 }
  0x7f   :  { %1740 = vmatprep.subr.bf16.mxu0 %v1739_v46  ;;  %v1751_v56 = vpack.c.bf16 %v97_v51, %v96_v52  ;;  %v2272_v51 = vld [vmem:[%s2446_s4 + $0x30] sm:$0xff]  ;;  %v2281_v52 = vld [vmem:[%s2446_s4 + $0x38] sm:$0xff] }
  0x80   :  { %v91_v54 = vpop.permute.xlu1 %90  ;;  %v89_v55 = vpop.permute.xlu0 %88 }
  0x81   :  { %v99_v57 = vmul.f32 %v2171_v50, %v91_v54  ;;  %v98_v58 = vmul.f32 %v2171_v50, %v89_v55 }
  0x82   :  { %1742 = vmatpush3.bf16.msra.mxu0 %v1739_v46  ;;  %v2244_v46 = vld [vmem:[%s2446_s4 + $0x10] sm:$0xff] }
  0x83   :  { %1744 = vmatprep.subr.bf16.mxu0 %v1743_v49  ;;  %v1755_v59 = vpack.c.bf16 %v99_v57, %v98_v58 }
  0x86   :  { %1746 = vmatpush3.bf16.msra.mxu0 %v1743_v49  ;;  %v2267_v49 = vld [vmem:[%s2446_s4 + $0x28] sm:$0xff] }
  0x87   :  { %1748 = vmatprep.subr.bf16.mxu0 %v1747_v53 }
  0x8a   :  { %1750 = vmatpush3.bf16.msra.mxu0 %v1747_v53  ;;  %v2288_v53 = vld [vmem:[%s2448_s6] sm:$0x3] }
  0x8b   :  { %1752 = vmatprep.subr.bf16.mxu0 %v1751_v56  ;;  %1605 = vmatprep.subr.msk.mxu1 %vm554_vm2, %v2288_v53 }
  0x8e   :  { %1754 = vmatpush3.bf16.msra.mxu0 %v1751_v56 }
  0x8f   :  { %1756 = vmatprep.subr.bf16.mxu0 %v1755_v59 }
  0x91   :  { %v108_v2 = vpop.permute.xlu1 %107  ;;  %v103_v3 = vpop.permute.xlu0 %102 }
  0x92   :  { %1758 = vmatpush3.bf16.msra.mxu0 %v1755_v59 }
  0x95   :  { %1528 = vmatmul.mubr.msk.f32.vlgmr.msra.gmra.mrb[0].mxu0 %vm120_vm0, %v65_v60  ;;  %v113_v13 = vpop.permute.xlu1 %112  ;;  %v118_v17 = vpop.permute.xlu0 %117 }
  0x96   :  { %1530 = vmatprep.mubr.msk.f32.mxu0 %vm120_vm0, %v66_v61 }
  0x99   :  { %1531 = vmatmul.mubr.msk.f32.gmra.mrb[2].mxu0 %vm120_vm0, %v67_v62 }
  0x9a   :  { %1593 = vmatprep.mubr.msk.f32.mxu0 %vm327_vm1, %v2224_v28  ;;  %v487_v31 = vpop.permute.xlu1 %486 }
 0x168   :  { %v1529_v4 = vpop.f32.mrb[0].mxu0 }
 0x169   :  { %v199_v7 = vpop.f32.mrb[1].mxu0  ;;  %v2203_v9 = vadd.f32 %v1529_v4, %v108_v2 }
 0x16a   :  { %v2201_v8 = vadd.f32 %v199_v7, %v103_v3 }
 0x16b   :  { %v219_v23 = vmul.f32 %v2203_v9, %v2203_v9 }
 0x16c   :  { %v1532_v12 = vpop.f32.mrb[2].mxu0  ;;  %1565 = vmatprep.mubr.f32.mxu1 %v2201_v8  ;;  %v218_v22 = vmul.f32 %v2201_v8, %v2201_v8 }
 0x16d   :  { %v209_v16 = vpop.f32.mrb[3].mxu0  ;;  %1566 = vmatmul.mubr.f32.vlgmr.msra.gmra.mrb[0].mxu1 %v2203_v9  ;;  %v2209_v20 = vadd.f32 %v1532_v12, %v118_v17 }
 0x16e   :  { %v2207_v19 = vadd.f32 %v209_v16, %v113_v13  ;;  %1606 = vmatpush3.msk.msra.mxu1 %vm554_vm2, %v2288_v53 }
 0x16f   :  { %v221_v26 = vmul.f32 %v2209_v20, %v2209_v20  ;;  %1832 = vmatprep.subr.bf16.mxu1 %v2089_v11 }
 0x170   :  { %1568 = vmatprep.mubr.f32.mxu1 %v2207_v19  ;;  %v220_v25 = vmul.f32 %v2207_v19, %v2207_v19 }
 0x171   :  { %1569 = vmatmul.mubr.f32.gmra.mrb[2].mxu1 %v2209_v20 }
 0x172   :  { %1571 = vmatprep.mubr.f32.mxu1 %v218_v22 }
 0x175   :  { %1572 = vmatmul.mubr.f32.gmra.mrb[4].mxu1 %v219_v23 }
 0x176   :  { %1574 = vmatprep.mubr.f32.mxu1 %v220_v25 }
 0x179   :  { %1575 = vmatmul.mubr.f32.gmra.mrb[6].mxu1 %v221_v26 }
 0x240   :  { %v1567_v32 = vpop.f32.mrb[0].mxu1 }
 0x241   :  { %v288_v33 = vpop.f32.mrb[1].mxu1 }
 0x242   :  { %v1791_v34 = vpack.c.bf16 %v1567_v32, %v288_v33 }
 0x244   :  { %v1570_v35 = vpop.f32.mrb[2].mxu1  ;;  %1792 = vmatprep.subr.bf16.mxu0 %v1791_v34 }
 0x245   :  { %v298_v36 = vpop.f32.mrb[3].mxu1  ;;  %1794 = vmatpush3.bf16.msra.mxu0 %v1791_v34 }
 0x246   :  { %v1795_v38 = vpack.c.bf16 %v1570_v35, %v298_v36 }
 0x248   :  { %v1573_v39 = vpop.f32.mrb[4].mxu1  ;;  %1796 = vmatprep.subr.bf16.mxu0 %v1795_v38 }
 0x249   :  { %v308_v40 = vpop.f32.mrb[5].mxu1  ;;  %1798 = vmatpush3.bf16.msra.mxu0 %v1795_v38 }
 0x24a   :  { %v1799_v41 = vpack.c.bf16 %v1573_v39, %v308_v40 }
 0x24c   :  { %v1576_v42 = vpop.f32.mrb[6].mxu1  ;;  %1800 = vmatprep.subr.bf16.mxu0 %v1799_v41 }
 0x24d   :  { %v318_v43 = vpop.f32.mrb[7].mxu1  ;;  %1802 = vmatpush3.bf16.msra.mxu0 %v1799_v41  ;;  %v495_v41 = vpop.permute.xlu1 %494 }
 0x24e   :  { %v1803_v44 = vpack.c.bf16 %v1576_v42, %v318_v43  ;;  %v491_v42 = vpop.permute.xlu0 %490 }
 0x250   :  { %1804 = vmatprep.subr.bf16.mxu0 %v1803_v44 }
 0x251   :  { %1806 = vmatpush3.bf16.msra.mxu0 %v1803_v44  ;;  %v499_v43 = vpop.permute.xlu1 %498 }
 0x254   :  { %1594 = vmatmul.mubr.msk.f32.vlgmr.msra.gmra.mrb[4].mxu0 %vm327_vm1, %v2239_v45 }
 0x255   :  { %1596 = vmatprep.mubr.msk.f32.mxu0 %vm327_vm1, %v2244_v46 }
 0x258   :  { %1597 = vmatmul.mubr.msk.f32.gmra.mrb[6].mxu0 %vm327_vm1, %v2253_v47 }
 0x259   :  { %1599 = vmatprep.mubr.msk.f32.mxu0 %vm327_vm1, %v2258_v48 }
 0x25c   :  { %1600 = vmatmul.mubr.msk.f32.gmra.mrb[8].mxu0 %vm327_vm1, %v2267_v49 }
 0x25d   :  { %1602 = vmatprep.mubr.msk.f32.mxu0 %vm327_vm1, %v2272_v51 }
 0x260   :  { %1603 = vmatmul.mubr.msk.f32.gmra.mrb[10].mxu0 %vm327_vm1, %v2281_v52 }
 0x327   :  { %v1595_v54 = vpop.f32.mrb[4].mxu0 }
 0x328   :  { %v418_v55 = vpop.f32.mrb[5].mxu0  ;;  %v458_v57 = vmul.f32 0.00390625, %v1595_v54 }
 0x329   :  { %v457_v59 = vmul.f32 0.00390625, %v418_v55 }
 0x32a   :  { %v466_v61 = vmul.f32 %v458_v57, %v458_v57 }
 0x32b   :  { %v1598_v56 = vpop.f32.mrb[6].mxu0  ;;  %v465_v2 = vmul.f32 %v457_v59, %v457_v59 }
 0x32c   :  { %v428_v58 = vpop.f32.mrb[7].mxu0  ;;  %v460_v62 = vmul.f32 0.00390625, %v1598_v56 }
 0x32d   :  { %v459_v3 = vmul.f32 0.00390625, %v428_v58  ;;  %v515_v58 = vpop.permute.xlu1 %514 }
 0x32e   :  { %v468_v16 = vmul.f32 %v460_v62, %v460_v62 }
 0x32f   :  { %v1601_v60 = vpop.f32.mrb[8].mxu0  ;;  %v467_v25 = vmul.f32 %v459_v3, %v459_v3 }
 0x330   :  { %v462_v63 = vmul.f32 0.00390625, %v1601_v60  ;;  %v438_v0 = vpop.f32.mrb[9].mxu0 }
 0x331   :  { %v461_v4 = vmul.f32 0.00390625, %v438_v0 }
 0x332   :  { %v470_v7 = vsub.f32 %v462_v63, %v466_v61 }
 0x333   :  { %v469_v12 = vsub.f32 %v461_v4, %v465_v2  ;;  %v1604_v13 = vpop.f32.mrb[10].mxu0  ;;  %v511_v4 = vpop.permute.xlu0 %510 }
 0x334   :  { %v474_v17 = vmax.f32 %v470_v7, 0.0  ;;  %v464_v22 = vmul.f32 0.00390625, %v1604_v13  ;;  %v448_v23 = vpop.f32.mrb[11].mxu0 }
 0x335   :  { %v473_v26 = vmax.f32 %v469_v12, 0.0  ;;  %v463_v29 = vmul.f32 0.00390625, %v448_v23 }
 0x336   :  { %v478_v32 = vadd.f32 1e-05, %v474_v17  ;;  %v472_v33 = vsub.f32 %v464_v22, %v468_v16 }
 0x337   :  { %v477_v34 = vadd.f32 1e-05, %v473_v26  ;;  %v471_v35 = vsub.f32 %v463_v29, %v467_v25  ;;  %v523_v17 = vpop.permute.xlu0 %522 }
 0x338   :  { %1910 = vrsqrt.f32 %v478_v32  ;;  %v476_v36 = vmax.f32 %v472_v33, 0.0 }
 0x339   :  { %1912 = vrsqrt.f32 %v477_v34  ;;  %v475_v38 = vmax.f32 %v471_v35, 0.0 }
 0x33a   :  { %v480_v39 = vadd.f32 1e-05, %v476_v36 }
 0x33b   :  { %v479_v40 = vadd.f32 1e-05, %v475_v38 }
 0x33c   :  { %1914 = vrsqrt.f32 %v480_v39 }
 0x33d   :  { %1916 = vrsqrt.f32 %v479_v40 }
 0x342   :  { %v1911_v44 = vpop.eup %1910 }
 0x343   :  { %v1913_v54 = vpop.eup %1912  ;;  %v502_v55 = vmul.f32 %v1911_v44, %v491_v42 }
 0x344   :  { %v501_v56 = vmul.f32 %v1913_v54, %v487_v31 }
 0x345   :  { %v506_v60 = vmul.f32 %v502_v55, %v458_v57  ;;  %v519_v57 = vpop.permute.xlu1 %518 }
 0x346   :  { %v1915_v61 = vpop.eup %1914  ;;  %1607 = vmatprep.mubr.msk.f32.mxu1 %vm529_vm3, %v501_v56  ;;  %v505_v63 = vmul.f32 %v501_v56, %v457_v59 }
 0x347   :  { %v1917_v0 = vpop.eup %1916  ;;  %v504_v2 = vmul.f32 %v1915_v61, %v499_v43  ;;  %1608 = vmatmul.mubr.msk.f32.vlgmr.msra.gmra.mrb[8].mxu1 %vm529_vm3, %v502_v55  ;;  %v526_v59 = vsub.f32 %v515_v58, %v506_v60 }
 0x348   :  { %v503_v7 = vmul.f32 %v1917_v0, %v495_v41  ;;  %1834 = vmatpush3.bf16.msra.mxu1 %v2089_v11  ;;  %v525_v13 = vsub.f32 %v511_v4, %v505_v63 }
 0x349   :  { %v508_v12 = vmul.f32 %v504_v2, %v460_v62  ;;  %1836 = vmatprep.subr.bf16.mxu1 %v2102_v15 }
 0x34a   :  { %1610 = vmatprep.mubr.msk.f32.mxu1 %vm529_vm3, %v503_v7  ;;  %v507_v16 = vmul.f32 %v503_v7, %v459_v3 }
 0x34b   :  { %1611 = vmatmul.mubr.msk.f32.gmra.mrb[10].mxu1 %vm529_vm3, %v504_v2  ;;  %v528_v11 = vsub.f32 %v523_v17, %v508_v12 }
 0x34c   :  { %1613 = vmatprep.mubr.msk.f32.mxu1 %vm529_vm3, %v525_v13  ;;  %1838 = vmatpush3.bf16.msra.mxu1 %v2102_v15  ;;  %v527_v22 = vsub.f32 %v519_v57, %v507_v16 }
 0x34d   :  { %1840 = vmatprep.subr.bf16.mxu1 %v2114_v18 }
 0x34f   :  { %1614 = vmatmul.mubr.msk.f32.gmra.mrb[12].mxu1 %vm529_vm3, %v526_v59 }
 0x350   :  { %1616 = vmatprep.mubr.msk.f32.mxu1 %vm529_vm3, %v527_v22  ;;  %1842 = vmatpush3.bf16.msra.mxu1 %v2114_v18 }
 0x351   :  { %1844 = vmatprep.subr.bf16.mxu1 %v2125_v21 }
 0x353   :  { %1617 = vmatmul.mubr.msk.f32.gmra.mrb[14].mxu1 %vm529_vm3, %v528_v11 }
 0x354   :  { %1846 = vmatpush3.bf16.msra.mxu1 %v2125_v21 }
 0x355   :  { %1848 = vmatprep.subr.bf16.mxu1 %v2135_v24 }
 0x358   :  { %1850 = vmatpush3.bf16.msra.mxu1 %v2135_v24 }
 0x359   :  { %1852 = vmatprep.subr.bf16.mxu1 %v2145_v27 }
 0x35c   :  { %1854 = vmatpush3.bf16.msra.mxu1 %v2145_v27 }
 0x35d   :  { %1856 = vmatprep.subr.bf16.mxu1 %v2155_v30 }
 0x360   :  { %1858 = vmatpush3.bf16.msra.mxu1 %v2155_v30 }
 0x361   :  { %1860 = vmatprep.subr.bf16.mxu1 %v2197_v1 }
 0x364   :  { %1862 = vmatpush3.bf16.msra.mxu1 %v2197_v1 }
 0x41a   :  { %v1609_v15 = vpop.f32.mrb[8].mxu1 }
 0x41b   :  { %v624_v18 = vpop.f32.mrb[9].mxu1  ;;  %v664_v3 = vmul.f32 %v1609_v15, %v2203_v9 }
 0x41c   :  { %v663_v24 = vmul.f32 %v624_v18, %v2201_v8 }
 0x41e   :  { %v1612_v62 = vpop.f32.mrb[10].mxu1 }
 0x41f   :  { %v634_v21 = vpop.f32.mrb[11].mxu1  ;;  %v666_v29 = vmul.f32 %v1612_v62, %v2209_v20 }
 0x420   :  { %v665_v30 = vmul.f32 %v634_v21, %v2207_v19 }
 0x422   :  { %v1615_v23 = vpop.f32.mrb[12].mxu1 }
 0x423   :  { %v668_v25 = vadd.f32 %v1615_v23, %v664_v3  ;;  %v644_v26 = vpop.f32.mrb[13].mxu1  ;;  %v1975_v23 = vmov 3  }
 0x424   :  { %v667_v27 = vadd.f32 %v663_v24, %v644_v26  ;;  %v707_v24 = vld [vmem:[%s2444_s2] sm:$0xff]  ;;  %1904 = vset.pattern.permute.xlu1 %v1975_v23  ;;  %1905 = vset.pattern.permute.xlu0 %v1975_v23 }
 0x425   :  { %v676_v31 = vmul.f32 0.044715, %v668_v25  ;;  %v672_v2 = vmul.f32 0.5, %v668_v25  ;;  %1643 = vmatprep.mubr.msk.f32.mxu0 %vm120_vm0, %v707_v24 }
 0x426   :  { %v675_v32 = vmul.f32 0.044715, %v667_v27  ;;  %v1618_v33 = vpop.f32.mrb[14].mxu1  ;;  %v671_v7 = vmul.f32 0.5, %v667_v27 }
 0x427   :  { %v680_v1 = vmul.f32 %v676_v31, %v668_v25  ;;  %v670_v34 = vadd.f32 %v1618_v33, %v666_v29  ;;  %v654_v35 = vpop.f32.mrb[15].mxu1 }
 0x428   :  { %v679_v36 = vmul.f32 %v675_v32, %v667_v27  ;;  %v669_v38 = vadd.f32 %v665_v30, %v654_v35 }
 0x429   :  { %v678_v39 = vmul.f32 0.044715, %v670_v34  ;;  %v684_v9 = vmul.f32 %v680_v1, %v668_v25  ;;  %v674_v17 = vmul.f32 0.5, %v670_v34 }
 0x42a   :  { %v677_v40 = vmul.f32 0.044715, %v669_v38  ;;  %v683_v8 = vmul.f32 %v679_v36, %v667_v27  ;;  %v673_v11 = vmul.f32 0.5, %v669_v38 }
 0x42b   :  { %v682_v41 = vmul.f32 %v678_v39, %v670_v34  ;;  %v688_v42 = vadd.f32 %v684_v9, %v668_v25 }
 0x42c   :  { %v681_v43 = vmul.f32 %v677_v40, %v669_v38  ;;  %v687_v44 = vadd.f32 %v683_v8, %v667_v27 }
 0x42d   :  { %v692_v54 = vmul.f32 0.7978846, %v688_v42  ;;  %v686_v20 = vmul.f32 %v682_v41, %v670_v34 }
 0x42e   :  { %v691_v55 = vmul.f32 0.7978846, %v687_v44  ;;  %v685_v56 = vmul.f32 %v681_v43, %v669_v38  ;;  %v708_v43 = vld [vmem:[%s2444_s2 + $0x8] sm:$0xff]  ;;  %v709_v44 = vld [vmem:[%s2444_s2 + $0x10] sm:$0xff] }
 0x42f   :  { %1918 = vtanh.f32 %v692_v54  ;;  %v690_v19 = vadd.f32 %v686_v20, %v670_v34 }
 0x430   :  { %1920 = vtanh.f32 %v691_v55  ;;  %v689_v58 = vadd.f32 %v685_v56, %v669_v38 }
 0x431   :  { %v694_v60 = vmul.f32 0.7978846, %v690_v19 }
 0x432   :  { %v693_v61 = vmul.f32 0.7978846, %v689_v58 }
 0x433   :  { %1922 = vtanh.f32 %v694_v60 }
 0x434   :  { %1924 = vtanh.f32 %v693_v61 }
 0x439   :  { %v1919_v63 = vpop.eup %1918 }
 0x43a   :  { %v1921_v0 = vpop.eup %1920  ;;  %v700_v4 = vadd.f32 1.0, %v1919_v63 }
 0x43b   :  { %v699_v12 = vadd.f32 1.0, %v1921_v0 }
 0x43c   :  { %v704_v13 = vmul.f32 %v700_v4, %v672_v2 }
 0x43d   :  { %v1923_v16 = vpop.eup %1922  ;;  %v703_v57 = vmul.f32 %v699_v12, %v671_v7 }
 0x43e   :  { %v1925_v59 = vpop.eup %1924  ;;  %713 = vrot.lane.b32.xlu0 %v704_v13, %s1970_s9  ;;  %v702_v22 = vadd.f32 1.0, %v1923_v16  ;;  %v1976_v16 = vmov 4  }
 0x43f   :  { %711 = vrot.lane.b32.xlu1 %v703_v57, %s1970_s9  ;;  %v701_v15 = vadd.f32 1.0, %v1925_v59  ;;  %v1815_v18 = vpack.c.bf16 %v704_v13, %v703_v57 }
 0x440   :  { %v706_v62 = vmul.f32 %v702_v22, %v674_v17 }
 0x441   :  { %v705_v21 = vmul.f32 %v701_v15, %v673_v11 }
 0x442   :  { %717 = vrot.lane.b32.xlu0 %v706_v62, %s1970_s9 }
 0x443   :  { %715 = vrot.lane.b32.xlu1 %v705_v21, %s1970_s9  ;;  %v1819_v3 = vpack.c.bf16 %v706_v62, %v705_v21 }
 0x446   :  { %725 = vrot.lane.b32.xlu0 %v704_v13, %s1971_s14 }
 0x447   :  { %723 = vrot.lane.b32.xlu1 %v703_v57, %s1971_s14  ;;  %v1977_v57 = vmov 5  }
 0x44a   :  { %729 = vrot.lane.b32.xlu0 %v706_v62, %s1971_s14 }
 0x44b   :  { %727 = vrot.lane.b32.xlu1 %v705_v21, %s1971_s14 }
 0x44e   :  { %740 = vperm.xlu0 %1905, %v2069_v5  }
 0x44f   :  { %736 = vperm.xlu1 %1904, %v2074_v6  }
 0x452   :  { %1906 = vset.pattern.permute.xlu0 %v1976_v16 }
 0x453   :  { %744 = vperm.xlu1 %1904, %v2087_v10   ;;  %1091 = vperm.xlu0 %1906, %v2074_v6  }
 0x457   :  { %748 = vperm.xlu1 %1904, %v2100_v14   ;;  %1103 = vperm.xlu0 %1906, %v2100_v14  }
 0x45b   :  { %1907 = vset.pattern.permute.xlu1 %v1976_v16  ;;  %1909 = vset.pattern.permute.xlu0 %v1977_v57 }
 0x45c   :  { %1095 = vperm.xlu1 %1907, %v2069_v5   ;;  %1119 = vperm.xlu0 %1909, %v2069_v5  }
 0x460   :  { %1099 = vperm.xlu1 %1907, %v2087_v10  }
 0x464   :  { %1908 = vset.pattern.permute.xlu1 %v1977_v57 }
 0x465   :  { %1115 = vperm.xlu1 %1908, %v2074_v6  }
 0x469   :  { %1123 = vperm.xlu1 %1908, %v2087_v10  }
 0x46d   :  { %1127 = vperm.xlu1 %1908, %v2100_v14  }
 0x4b0   :  { %v714_v25 = vpop.permute.xlu0 %713 }
 0x4b1   :  { %v720_v26 = vmul.f32 %v714_v25, %v2163_v37  ;;  %v712_v27 = vpop.permute.xlu1 %711 }
 0x4b2   :  { %v719_v29 = vmul.f32 %v712_v27, %v2163_v37 }
 0x4b4   :  { %v1807_v31 = vpack.c.bf16 %v720_v26, %v719_v29  ;;  %v718_v30 = vpop.permute.xlu0 %717 }
 0x4b5   :  { %v722_v32 = vmul.f32 %v718_v30, %v2163_v37  ;;  %v716_v33 = vpop.permute.xlu1 %715 }
 0x4b6   :  { %v721_v1 = vmul.f32 %v716_v33, %v2163_v37  ;;  %1808 = vmatprep.subr.bf16.mxu0 %v1807_v31 }
 0x4b7   :  { %1810 = vmatpush3.bf16.msra.mxu0 %v1807_v31 }
 0x4b8   :  { %v1811_v34 = vpack.c.bf16 %v722_v32, %v721_v1  ;;  %v726_v35 = vpop.permute.xlu0 %725 }
 0x4b9   :  { %v724_v36 = vpop.permute.xlu1 %723  ;;  %v732_v38 = vmul.f32 %v726_v35, %v2171_v50 }
 0x4ba   :  { %1812 = vmatprep.subr.bf16.mxu0 %v1811_v34  ;;  %v731_v39 = vmul.f32 %v724_v36, %v2171_v50 }
 0x4bb   :  { %1814 = vmatpush3.bf16.msra.mxu0 %v1811_v34 }
 0x4bc   :  { %1816 = vmatprep.subr.bf16.mxu0 %v1815_v18  ;;  %v730_v9 = vpop.permute.xlu0 %729  ;;  %v1823_v8 = vpack.c.bf16 %v732_v38, %v731_v39 }
 0x4bd   :  { %v728_v40 = vpop.permute.xlu1 %727  ;;  %v734_v41 = vmul.f32 %v730_v9, %v2171_v50 }
 0x4be   :  { %v733_v37 = vmul.f32 %v728_v40, %v2171_v50  ;;  %v710_v50 = vld [vmem:[%s2444_s2 + $0x18] sm:$0xff] }
 0x4bf   :  { %1818 = vmatpush3.bf16.msra.mxu0 %v1815_v18 }
 0x4c0   :  { %1820 = vmatprep.subr.bf16.mxu0 %v1819_v3  ;;  %v1827_v42 = vpack.c.bf16 %v734_v41, %v733_v37 }
 0x4c3   :  { %1822 = vmatpush3.bf16.msra.mxu0 %v1819_v3 }
 0x4c4   :  { %1824 = vmatprep.subr.bf16.mxu0 %v1823_v8 }
 0x4c7   :  { %1826 = vmatpush3.bf16.msra.mxu0 %v1823_v8 }
 0x4c8   :  { %1828 = vmatprep.subr.bf16.mxu0 %v1827_v42 }
 0x4cb   :  { %1830 = vmatpush3.bf16.msra.mxu0 %v1827_v42 }
 0x4cd   :  { %v741_v56 = vpop.permute.xlu0 %740 }
 0x4ce   :  { %1644 = vmatmul.mubr.msk.f32.vlgmr.msra.gmra.mrb[12].mxu0 %vm120_vm0, %v708_v43  ;;  %v737_v54 = vpop.permute.xlu1 %736 }
 0x4cf   :  { %1646 = vmatprep.mubr.msk.f32.mxu0 %vm120_vm0, %v709_v44 }
 0x4d2   :  { %1647 = vmatmul.mubr.msk.f32.gmra.mrb[14].mxu0 %vm120_vm0, %v710_v50  ;;  %v745_v20 = vpop.permute.xlu1 %744 }
 0x4d3   :  { %1709 = vmatprep.mubr.msk.f32.mxu0 %vm327_vm1, %v2224_v28 }
 0x4d6   :  { %v749_v0 = vpop.permute.xlu1 %748 }
 0x4db   :  { %v1096_v37 = vpop.permute.xlu1 %1095 }
 0x4df   :  { %v1100_v50 = vpop.permute.xlu1 %1099 }
 0x5a1   :  { %v1645_v55 = vpop.f32.mrb[12].mxu0 }
 0x5a2   :  { %v829_v19 = vpop.f32.mrb[13].mxu0  ;;  %v2362_v60 = vadd.f32 %v1645_v55, %v741_v56 }
 0x5a3   :  { %v2360_v58 = vadd.f32 %v829_v19, %v737_v54  ;;  %v1092_v54 = vpop.permute.xlu0 %1091 }
 0x5a4   :  { %v849_v7 = vmul.f32 %v2362_v60, %v2362_v60 }
 0x5a5   :  { %v1648_v61 = vpop.f32.mrb[14].mxu0  ;;  %1681 = vmatprep.mubr.f32.mxu1 %v2360_v58  ;;  %v848_v28 = vmul.f32 %v2360_v58, %v2360_v58 }
 0x5a6   :  { %v839_v63 = vpop.f32.mrb[15].mxu0  ;;  %1682 = vmatmul.mubr.f32.vlgmr.msra.gmra.mrb[16].mxu1 %v2362_v60  ;;  %v2368_v4 = vadd.f32 %v1648_v61, %v749_v0  ;;  %v1116_v61 = vpop.permute.xlu1 %1115 }
 0x5a7   :  { %v2366_v2 = vadd.f32 %v839_v63, %v745_v20  ;;  %v1104_v63 = vpop.permute.xlu0 %1103 }
 0x5a8   :  { %v851_v13 = vmul.f32 %v2368_v4, %v2368_v4 }
 0x5a9   :  { %1684 = vmatprep.mubr.f32.mxu1 %v2366_v2  ;;  %v850_v12 = vmul.f32 %v2366_v2, %v2366_v2 }
 0x5aa   :  { %1685 = vmatmul.mubr.f32.gmra.mrb[18].mxu1 %v2368_v4 }
 0x5ab   :  { %1687 = vmatprep.mubr.f32.mxu1 %v848_v28 }
 0x5ae   :  { %1688 = vmatmul.mubr.f32.gmra.mrb[20].mxu1 %v849_v7 }
 0x5af   :  { %1690 = vmatprep.mubr.f32.mxu1 %v850_v12 }
 0x5b2   :  { %1691 = vmatmul.mubr.f32.gmra.mrb[22].mxu1 %v851_v13 }
 0x5b3   :  { %1715 = vmatprep.mubr.msk.f32.mxu1 %vm327_vm1, %v2258_v48 }
 0x679   :  { %v1683_v48 = vpop.f32.mrb[16].mxu1 }
 0x67a   :  { %v918_v59 = vpop.f32.mrb[17].mxu1 }
 0x67b   :  { %v1863_v17 = vpack.c.bf16 %v1683_v48, %v918_v59  ;;  %v1124_v59 = vpop.permute.xlu1 %1123 }
 0x67d   :  { %v1686_v22 = vpop.f32.mrb[18].mxu1  ;;  %1864 = vmatprep.subr.bf16.mxu0 %v1863_v17  ;;  %1879 = vmatprep.subr.bf16.mxu1 %v1863_v17 }
 0x67e   :  { %v928_v11 = vpop.f32.mrb[19].mxu1  ;;  %1866 = vmatpush3.bf16.msra.mxu0 %v1863_v17  ;;  %1883 = vmatpush3.bf16.msra.mxu1 %v1863_v17 }
 0x67f   :  { %v1867_v15 = vpack.c.bf16 %v1686_v22, %v928_v11  ;;  %v1120_v22 = vpop.permute.xlu0 %1119 }
 0x681   :  { %v1689_v18 = vpop.f32.mrb[20].mxu1  ;;  %1868 = vmatprep.subr.bf16.mxu0 %v1867_v15  ;;  %1880 = vmatprep.subr.bf16.mxu1 %v1867_v15 }
 0x682   :  { %v938_v6 = vpop.f32.mrb[21].mxu1  ;;  %1870 = vmatpush3.bf16.msra.mxu0 %v1867_v15  ;;  %1884 = vmatpush3.bf16.msra.mxu1 %v1867_v15 }
 0x683   :  { %v1871_v5 = vpack.c.bf16 %v1689_v18, %v938_v6  ;;  %v1128_v18 = vpop.permute.xlu1 %1127 }
 0x685   :  { %v1692_v10 = vpop.f32.mrb[22].mxu1  ;;  %1872 = vmatprep.subr.bf16.mxu0 %v1871_v5  ;;  %1881 = vmatprep.subr.bf16.mxu1 %v1871_v5 }
 0x686   :  { %v948_v14 = vpop.f32.mrb[23].mxu1  ;;  %1874 = vmatpush3.bf16.msra.mxu0 %v1871_v5  ;;  %1885 = vmatpush3.bf16.msra.mxu1 %v1871_v5 }
 0x687   :  { %v1875_v62 = vpack.c.bf16 %v1692_v10, %v948_v14 }
 0x689   :  { %1876 = vmatprep.subr.bf16.mxu0 %v1875_v62  ;;  %1882 = vmatprep.subr.bf16.mxu1 %v1875_v62 }
 0x68a   :  { %1878 = vmatpush3.bf16.msra.mxu0 %v1875_v62  ;;  %1886 = vmatpush3.bf16.msra.mxu1 %v1875_v62 }
 0x68b   :  { %1721 = vmatprep.subr.msk.mxu0 %vm554_vm2, %v2288_v53 }
 0x68d   :  { %1710 = vmatmul.mubr.msk.f32.vlgmr.msra.gmra.mrb[16].mxu0 %vm327_vm1, %v2239_v45  ;;  %1716 = vmatmul.mubr.msk.f32.vlgmr.msra.gmra.mrb[24].mxu1 %vm327_vm1, %v2267_v49 }
 0x68e   :  { %1712 = vmatprep.mubr.msk.f32.mxu0 %vm327_vm1, %v2244_v46  ;;  %1718 = vmatprep.mubr.msk.f32.mxu1 %vm327_vm1, %v2272_v51 }
 0x68f   :  { %1722 = vmatpush3.msk.msra.mxu0 %vm554_vm2, %v2288_v53 }
 0x691   :  { %1713 = vmatmul.mubr.msk.f32.gmra.mrb[18].mxu0 %vm327_vm1, %v2253_v47  ;;  %1719 = vmatmul.mubr.msk.f32.gmra.mrb[26].mxu1 %vm327_vm1, %v2281_v52 }
 0x760   :  { %v1711_v21 = vpop.f32.mrb[16].mxu0  ;;  %v1717_v45 = vpop.f32.mrb[24].mxu1 }
 0x761   :  { %v1063_v3 = vmul.f32 0.00390625, %v1711_v21  ;;  %v1023_v24 = vpop.f32.mrb[17].mxu0  ;;  %v1067_v49 = vmul.f32 0.00390625, %v1717_v45  ;;  %v1043_v23 = vpop.f32.mrb[25].mxu1 }
 0x762   :  { %v1062_v25 = vmul.f32 0.00390625, %v1023_v24  ;;  %v1066_v46 = vmul.f32 0.00390625, %v1043_v23 }
 0x763   :  { %v1071_v26 = vmul.f32 %v1063_v3, %v1063_v3 }
 0x764   :  { %v1070_v27 = vmul.f32 %v1062_v25, %v1062_v25  ;;  %v1714_v51 = vpop.f32.mrb[18].mxu0  ;;  %v1720_v29 = vpop.f32.mrb[26].mxu1 }
 0x765   :  { %v1075_v31 = vsub.f32 %v1067_v49, %v1071_v26  ;;  %v1065_v53 = vmul.f32 0.00390625, %v1714_v51  ;;  %v1033_v30 = vpop.f32.mrb[19].mxu0  ;;  %v1069_v32 = vmul.f32 0.00390625, %v1720_v29  ;;  %v1053_v47 = vpop.f32.mrb[27].mxu1  ;;  %v1943_v51 = vld [vmem:[%s2442_s0] sm:$0xff] }
 0x766   :  { %v1074_v33 = vsub.f32 %v1066_v46, %v1070_v27  ;;  %v1064_v1 = vmul.f32 0.00390625, %v1033_v30  ;;  %v1068_v52 = vmul.f32 0.00390625, %v1053_v47  ;;  %v1942_v46 = vld [vmem:[%s2442_s0 + $0x8] sm:$0xff] }
 0x767   :  { %v1079_v34 = vmax.f32 %v1075_v31, 0.0  ;;  %v1073_v35 = vmul.f32 %v1065_v53, %v1065_v53 }
 0x768   :  { %v1078_v36 = vmax.f32 %v1074_v33, 0.0  ;;  %v1072_v38 = vmul.f32 %v1064_v1, %v1064_v1 }
 0x769   :  { %v1083_v39 = vadd.f32 1e-05, %v1079_v34  ;;  %v1077_v9 = vsub.f32 %v1069_v32, %v1073_v35 }
 0x76a   :  { %v1082_v40 = vadd.f32 1e-05, %v1078_v36  ;;  %v1076_v8 = vsub.f32 %v1068_v52, %v1072_v38 }
 0x76b   :  { %1926 = vrsqrt.f32 %v1083_v39  ;;  %v1081_v41 = vmax.f32 %v1077_v9, 0.0 }
 0x76c   :  { %1928 = vrsqrt.f32 %v1082_v40  ;;  %v1080_v42 = vmax.f32 %v1076_v8, 0.0 }
 0x76d   :  { %v1085_v43 = vadd.f32 1e-05, %v1081_v41 }
 0x76e   :  { %v1084_v44 = vadd.f32 1e-05, %v1080_v42 }
 0x76f   :  { %1930 = vrsqrt.f32 %v1085_v43 }
 0x770   :  { %1932 = vrsqrt.f32 %v1084_v44 }
 0x775   :  { %v1927_v20 = vpop.eup %1926 }
 0x776   :  { %v1929_v55 = vpop.eup %1928  ;;  %v1107_v56 = vmul.f32 %v1927_v20, %v1096_v37 }
 0x777   :  { %v1106_v19 = vmul.f32 %v1929_v55, %v1092_v54 }
 0x778   :  { %v1111_v0 = vmul.f32 %v1107_v56, %v1063_v3 }
 0x779   :  { %v1931_v28 = vpop.eup %1930  ;;  %v1110_v7 = vmul.f32 %v1106_v19, %v1062_v25  ;;  %1723 = vmatprep.mubr.msk.f32.mxu0 %vm529_vm3, %v1106_v19 }
 0x77a   :  { %v1933_v12 = vpop.eup %1932  ;;  %v1109_v13 = vmul.f32 %v1931_v28, %v1104_v63  ;;  %1724 = vmatmul.mubr.msk.f32.vlgmr.msra.gmra.mrb[20].mxu0 %vm529_vm3, %v1107_v56  ;;  %v1131_v11 = vsub.f32 %v1120_v22, %v1111_v0 }
 0x77b   :  { %v1108_v16 = vmul.f32 %v1933_v12, %v1100_v50  ;;  %v1130_v48 = vsub.f32 %v1116_v61, %v1110_v7 }
 0x77c   :  { %v1113_v57 = vmul.f32 %v1109_v13, %v1065_v53 }
 0x77d   :  { %v1112_v17 = vmul.f32 %v1108_v16, %v1064_v1  ;;  %1726 = vmatprep.mubr.msk.f32.mxu0 %vm529_vm3, %v1108_v16 }
 0x77e   :  { %1727 = vmatmul.mubr.msk.f32.gmra.mrb[22].mxu0 %vm529_vm3, %v1109_v13  ;;  %v1133_v6 = vsub.f32 %v1128_v18, %v1113_v57 }
 0x77f   :  { %1729 = vmatprep.mubr.msk.f32.mxu0 %vm529_vm3, %v1130_v48  ;;  %v1132_v15 = vsub.f32 %v1124_v59, %v1112_v17 }
 0x782   :  { %1730 = vmatmul.mubr.msk.f32.gmra.mrb[24].mxu0 %vm529_vm3, %v1131_v11 }
 0x783   :  { %1732 = vmatprep.mubr.msk.f32.mxu0 %vm529_vm3, %v1132_v15 }
 0x786   :  { %1733 = vmatmul.mubr.msk.f32.gmra.mrb[26].mxu0 %vm529_vm3, %v1133_v6 }
 0x84d   :  { %v1725_v5 = vpop.f32.mrb[20].mxu0 }
 0x84e   :  { %v1224_v10 = vpop.f32.mrb[21].mxu0  ;;  %v1264_v21 = vmul.f32 %v1725_v5, %v2362_v60 }
 0x84f   :  { %v1263_v45 = vmul.f32 %v1224_v10, %v2360_v58 }
 0x851   :  { %v1728_v14 = vpop.f32.mrb[22].mxu0 }
 0x852   :  { %v1234_v62 = vpop.f32.mrb[23].mxu0  ;;  %v1266_v25 = vmul.f32 %v1728_v14, %v2368_v4  ;;  %v1944_v4 = vld [vmem:[%s2442_s0 + $0x18] sm:$0xff] }
 0x853   :  { %v1265_v27 = vmul.f32 %v1234_v62, %v2366_v2  ;;  %v1945_v2 = vld [vmem:[%s2442_s0 + $0x10] sm:$0xff]  ;;  %s1978_s0 = smov [#allocation2]  }
 0x854   :  { %s1320_s25 = sshll.u32 %s1978_s0, 4  ;;  %s1321_s25 = int_to_ptr.vmem [resolvable:$true] %s1320_s25 }
 0x855   :  { %v1731_v3 = vpop.f32.mrb[24].mxu0  ;;  %s1946_s26 = scalar_lea.vmem %s1321_s25, 512  ;;  %p1951_p1 = scmp.lt.s32.totalorder %s1321_s25, %s1321_s25 }
 0x856   :  { %v1268_v24 = vadd.f32 %v1731_v3, %v1264_v21  ;;  %v1244_v49 = vpop.f32.mrb[25].mxu0  ;;  %p1947_p0 = scmp.ne.s32.totalorder %s1321_s25, %s1946_s26  ;;  %p1952_p2 = scmp.lt.s32.totalorder %s1946_s26, %s1946_s26 }
 0x857   :  { %v1267_v23 = vadd.f32 %v1263_v45, %v1244_v49 }
 0x858   :  { %v1272_v26 = vadd.f32 %v1942_v46, %v1268_v24  ;;  %p1953_p3 = por %p1952_p2, %p1951_p1 }
 0x859   :  { %v1271_v60 = vadd.f32 %v1943_v51, %v1267_v23  ;;  %v1734_v29 = vpop.f32.mrb[26].mxu0 }
 0x85a   :  { %v1280_v58 = vmul.f32 0.044715, %v1272_v26  ;;  %v1270_v31 = vadd.f32 %v1734_v29, %v1266_v25  ;;  %v1254_v53 = vpop.f32.mrb[27].mxu0  ;;  %v1276_v19 = vmul.f32 0.5, %v1272_v26  ;;  %p1954_p4 = pnand %p1953_p3, %p1947_p0 }
 0x85b   :  { %v1279_v30 = vmul.f32 0.044715, %v1271_v60  ;;  %v1269_v32 = vadd.f32 %v1265_v27, %v1254_v53  ;;  %v1275_v63 = vmul.f32 0.5, %v1271_v60 }
 0x85c   :  { %v1284_v47 = vmul.f32 %v1280_v58, %v1272_v26  ;;  %v1274_v33 = vadd.f32 %v1944_v4, %v1270_v31 }
 0x85d   :  { %v1283_v1 = vmul.f32 %v1279_v30, %v1271_v60  ;;  %v1273_v52 = vadd.f32 %v1945_v2, %v1269_v32 }
 0x85e   :  { %v1288_v34 = vmul.f32 %v1284_v47, %v1272_v26  ;;  %v1282_v35 = vmul.f32 0.044715, %v1274_v33  ;;  %v1278_v16 = vmul.f32 0.5, %v1274_v33 }
 0x85f   :  { %v1287_v36 = vmul.f32 %v1283_v1, %v1271_v60  ;;  %v1281_v38 = vmul.f32 0.044715, %v1273_v52  ;;  %v1277_v48 = vmul.f32 0.5, %v1273_v52 }
 0x860   :  { %v1292_v39 = vadd.f32 %v1288_v34, %v1272_v26  ;;  %v1286_v9 = vmul.f32 %v1282_v35, %v1274_v33 }
 0x861   :  { %v1291_v40 = vadd.f32 %v1287_v36, %v1271_v60  ;;  %v1285_v8 = vmul.f32 %v1281_v38, %v1273_v52 }
 0x862   :  { %v1296_v41 = vmul.f32 0.7978846, %v1292_v39  ;;  %v1290_v37 = vmul.f32 %v1286_v9, %v1274_v33 }
 0x863   :  { %v1295_v42 = vmul.f32 0.7978846, %v1291_v40  ;;  %v1289_v43 = vmul.f32 %v1285_v8, %v1273_v52 }
 0x864   :  { %1934 = vtanh.f32 %v1296_v41  ;;  %v1294_v44 = vadd.f32 %v1290_v37, %v1274_v33 }
 0x865   :  { %1936 = vtanh.f32 %v1295_v42  ;;  %v1293_v50 = vadd.f32 %v1289_v43, %v1273_v52 }
 0x866   :  { %v1298_v54 = vmul.f32 0.7978846, %v1294_v44 }
 0x867   :  { %v1297_v20 = vmul.f32 0.7978846, %v1293_v50 }
 0x868   :  { %1938 = vtanh.f32 %v1298_v54 }
 0x869   :  { %1940 = vtanh.f32 %v1297_v20 }
 0x86e   :  { %v1935_v55 = vpop.eup %1934 }
 0x86f   :  { %v1937_v56 = vpop.eup %1936  ;;  %v1304_v61 = vadd.f32 1.0, %v1935_v55 }
 0x870   :  { %v1303_v0 = vadd.f32 1.0, %v1937_v56 }
 0x871   :  { %v1308_v28 = vmul.f32 %v1304_v61, %v1276_v19 }
 0x872   :  { %v1939_v7 = vpop.eup %1938  ;;  %v1307_v12 = vmul.f32 %v1303_v0, %v1275_v63 }
 0x873   :  { %v1941_v13 = vpop.eup %1940  ;;  %v1306_v57 = vadd.f32 1.0, %v1939_v7  ;;  %1312 = vst [vmem:[#allocation2 + $0x8] sm:$0xff] %v1308_v28 }
 0x874   :  { %v1305_v59 = vadd.f32 1.0, %v1941_v13  ;;  %1311 = vst [vmem:[#allocation2] sm:$0xff] %v1307_v12 }
 0x875   :  { %v1310_v17 = vmul.f32 %v1306_v57, %v1278_v16 }
 0x876   :  { %v1309_v22 = vmul.f32 %v1305_v59, %v1277_v48 }
 0x877   :  { %1314 = vst [vmem:[#allocation2 + $0x18] sm:$0xff] %v1310_v17 }
 0x878   :  { %1313 = vst [vmem:[#allocation2 + $0x10] sm:$0xff] %v1309_v22 }
 0x879   :  { %1957 = shalt.err (!%p1954_p4)
}
 0x87a   :  { %s1958_s29 = scalar_lea.hbm %s2450_s8, 512 }
 0x87b   :  { %p1959_p5 = scmp.ne.s32.totalorder %s2450_s8, %s1958_s29  ;;  %p1962_p6 = scmp.lt.u32.totalorder %s1958_s29, %s2450_s8 }
 0x87d   :  { %p1964_p7 = pnand %p1962_p6, %p1959_p5 }
 0x87f   :  { %1967 = shalt.err (!%p1964_p7)
}
 0x880   :  { %s1979_s7 = smov 128   ;;  %s1980_s13 = smov 8  }
 0x881   :  { %1326 = dma.vmem_to_hbm [thread:$0]  %s1321_s25, 512, %s2450_s8, [#allocation3], %s1979_s7, %s1979_s7, %s1980_s13  }
 0x882   :  { %1968 = dma.done.wait [#allocation3], 512  }
 0x883   :  { %1969 = vsyncadd [#allocation3], 4294966784 }
 0x884   :  { %1330 = vsyncpa [#allocation3], 1 }

</bundles_post_ra>
